<compile_context>
chip_gen: v5e
topology: v5e:2x2
jax: 0.10.0
libtpu: 0.0.40
codegen_flags: <defaults>
</compile_context>

<pallas_src>
import functools

import jax
import jax.numpy as jnp
from jax.experimental import pallas as pl
from jax.experimental.pallas import tpu as pltpu

BN_EPS = 1e-5
LANE = 128  # all hidden widths / 2*out_dim are padded to one 128-lane tile


def _full_spec(shape):
    # Whole-array block (no grid): block_shape == array shape is always legal.
    return pl.BlockSpec(shape, lambda: (0,) * len(shape))


# ---------------- fully fused forward kernel --------------------------------
def _fused_kernel(x_ref, w_ref, vec_ref, o_ref, *, n_hidden, in0):
    """x_ref  : (B, in0)                float32
       w_ref  : (n_hidden+1, 128, 128)  float32, zero-padded (in, out) weights,
                last slab = merged head [W_mu | W_log_sigma].
       vec_ref: (2*n_hidden+1, 128)     float32, rows = gamma_0,beta_0,...,b_head.
       o_ref  : (B, 128)                float32, [mu | log_sigma | zeros]."""
    vecs = vec_ref[...]                       # one load of all per-feature vectors
    inv_b = 1.0 / x_ref.shape[0]              # static batch size

    h = x_ref[...]                            # (B, in0)
    for l in range(n_hidden):
        w_full = w_ref[l]                     # (128, 128)
        # First layer: x has only in0 real columns -> take the matching weight rows
        # (aligned sublane slice). Later layers: h is already 128-wide zero-padded.
        w = w_full[:in0, :] if l == 0 else w_full
        y = jnp.dot(h, w, preferred_element_type=jnp.float32)   # (B, 128)

        # One-pass batch statistics: both reductions read y directly (no mean->var dep).
        s1 = jnp.sum(y, axis=0, keepdims=True)                   # (1, 128)
        s2 = jnp.sum(y * y, axis=0, keepdims=True)               # (1, 128)
        mean = s1 * inv_b
        var = jnp.maximum(s2 * inv_b - mean * mean, 0.0)         # guard tiny negatives

        gamma = vecs[2 * l]                                      # (128,)
        beta = vecs[2 * l + 1]                                   # (128,)
        # Fold normalization + affine into one per-feature scale/shift.
        scale = gamma * jax.lax.rsqrt(var + BN_EPS)              # (1, 128)
        shift = beta - mean * scale                              # (1, 128)
        h = jnp.maximum(y * scale + shift, 0.0)                  # Linear->BN->ReLU

    # Merged dual head: one matmul producing a lane-dense [mu | log_sigma | 0] slab.
    w_head = w_ref[n_hidden]
    if n_hidden == 0:
        w_head = w_head[:in0, :]
    o_ref[...] = (jnp.dot(h, w_head, preferred_element_type=jnp.float32)
                  + vecs[2 * n_hidden])


# ---------------- one-time parameter packing (hoisted out of forward) -------
def prepare_params(params, layers):
    """Pack per-layer parameters into two slabs consumed by the fused kernel."""
    n_hidden = len(params["hidden"])
    in0 = layers[0]
    out_dim = layers[-1]
    assert in0 <= LANE and 2 * out_dim <= LANE
    assert all(w <= LANE for w in layers[1:-1])

    w_slab = jnp.zeros((n_hidden + 1, LANE, LANE), jnp.float32)
    vec_slab = jnp.zeros((2 * n_hidden + 1, LANE), jnp.float32)

    for l, (w_t, _b_unused, gamma, beta) in enumerate(params["hidden"]):
        fi, fo = w_t.shape
        w_slab = w_slab.at[l, :fi, :fo].set(w_t)
        vec_slab = vec_slab.at[2 * l, :fo].set(gamma)
        vec_slab = vec_slab.at[2 * l + 1, :fo].set(beta)

    wmu_t, bmu = params["out_mu"]
    wls_t, bls = params["out_log_sigma"]
    d_emb = wmu_t.shape[0]
    w_slab = w_slab.at[n_hidden, :d_emb, :out_dim].set(wmu_t)
    w_slab = w_slab.at[n_hidden, :d_emb, out_dim:2 * out_dim].set(wls_t)
    vec_slab = vec_slab.at[2 * n_hidden, :out_dim].set(bmu)
    vec_slab = vec_slab.at[2 * n_hidden, out_dim:2 * out_dim].set(bls)

    return {"w": w_slab, "vec": vec_slab,
            "n_hidden": n_hidden, "in0": in0, "out_dim": out_dim}


# ---------------- forward: single pallas_call + output split ----------------
def dense_gaussian_forward(packed, x):
    B = x.shape[0]
    n_hidden = packed["n_hidden"]
    out_dim = packed["out_dim"]

    kernel = functools.partial(_fused_kernel, n_hidden=n_hidden, in0=packed["in0"])
    out = pl.pallas_call(
        kernel,
        out_shape=jax.ShapeDtypeStruct((B, LANE), jnp.float32),
        in_specs=[_full_spec(x.shape),
                  _full_spec(packed["w"].shape),
                  _full_spec(packed["vec"].shape)],
        out_specs=_full_spec((B, LANE)),
        compiler_params=pltpu.CompilerParams(
            # Explicit scoped-VMEM limit so the kernel ports unchanged across
            # v5e (16 MiB default) / v6e / v7x; actual usage here is < 1 MiB.
            vmem_limit_bytes=32 * 1024 * 1024),
    )(x, packed["w"], packed["vec"])
    # Split the lane-dense head slab back into the two heads.
    return out[:, :out_dim], out[:, out_dim:2 * out_dim]


# ---------------- parameter construction (deterministic) --------------------
def init_params(layers, key):
    """PyTorch-style init: Linear W,b ~ U(-1/sqrt(in), 1/sqrt(in));
    BatchNorm gamma=1, beta=0.  Weights stored transposed as (in, out).
    Hidden biases are generated (for the reference check) but the fused kernel
    does not consume them — training-mode BN mean subtraction cancels them."""
    params = {"hidden": []}
    for _in, _out in zip(layers[:-2], layers[1:-1]):
        key, kw, kb = jax.random.split(key, 3)
        bound = 1.0 / jnp.sqrt(jnp.float32(_in))
        w_t = jax.random.uniform(kw, (_in, _out), jnp.float32, -bound, bound)
        b = jax.random.uniform(kb, (_out,), jnp.float32, -bound, bound)
        gamma = jnp.ones((_out,), jnp.float32)
        beta = jnp.zeros((_out,), jnp.float32)
        params["hidden"].append((w_t, b, gamma, beta))
    _in, _out = layers[-2], layers[-1]
    bound = 1.0 / jnp.sqrt(jnp.float32(_in))
    key, k1, k2, k3, k4 = jax.random.split(key, 5)
    params["out_mu"] = (
        jax.random.uniform(k1, (_in, _out), jnp.float32, -bound, bound),
        jax.random.uniform(k2, (_out,), jnp.float32, -bound, bound))
    params["out_log_sigma"] = (
        jax.random.uniform(k3, (_in, _out), jnp.float32, -bound, bound),
        jax.random.uniform(k4, (_out,), jnp.float32, -bound, bound))
    return params


# ---------------- pure-JAX reference (mirrors PyTorch, incl. hidden bias) ---
def _reference_forward(params, x):
    w = x
    for (w_t, b, gamma, beta) in params["hidden"]:
        y = w @ w_t + b
        mean = jnp.mean(y, axis=0, keepdims=True)
        var = jnp.mean((y - mean) ** 2, axis=0, keepdims=True)
        y_hat = (y - mean) / jnp.sqrt(var + BN_EPS)
        w = jnp.maximum(gamma * y_hat + beta, 0.0)
    wmu_t, bmu = params["out_mu"]
    wls_t, bls = params["out_log_sigma"]
    return w @ wmu_t + bmu, w @ wls_t + bls


if __name__ == "__main__":
    layers = [32, 64, 48, 16]   # layers[0]=input dim, layers[-1]=output dim
    batch = 8

    key = jax.random.PRNGKey(0)
    key, kx = jax.random.split(key)
    x = jax.random.normal(kx, (batch, layers[0]), jnp.float32)
    params = init_params(layers, key)

    # One-time packing (hoisted out of the forward path).
    packed = prepare_params(params, layers)
    packed = jax.tree_util.tree_map(
        lambda a: jax.device_put(a) if isinstance(a, jnp.ndarray) else a, packed)

    mu, log_sigma = dense_gaussian_forward(packed, x)
    jax.block_until_ready((mu, log_sigma))

    mu_ref, ls_ref = _reference_forward(params, x)
    assert mu.shape == (batch, layers[-1]) and log_sigma.shape == (batch, layers[-1])
    assert jnp.allclose(mu, mu_ref, atol=1e-4, rtol=1e-4)
    assert jnp.allclose(log_sigma, ls_ref, atol=1e-4, rtol=1e-4)

    print("KERNEL_OK")
</pallas_src>

<mosaic_0001>
module attributes {stable_mosaic.version = 11 : i64} {
  func.func @_fused_kernel(%arg0: memref<8x32xf32, #tpu.memory_space<vmem>>, %arg1: memref<3x128x128xf32, #tpu.memory_space<vmem>>, %arg2: memref<5x128xf32, #tpu.memory_space<vmem>>, %arg3: memref<8x128xf32, #tpu.memory_space<vmem>>) attributes {dimension_semantics = [], scalar_prefetch = 0 : i64, scratch_operands = 0 : i64, tpu.core_type = #tpu.core_type<tc>} {
    %c0 = arith.constant 0 : index
    %c0_0 = arith.constant 0 : index
    %0 = vector.load %arg2[%c0, %c0_0] : memref<5x128xf32, #tpu.memory_space<vmem>>, vector<5x128xf32>
    %c0_1 = arith.constant 0 : index
    %c0_2 = arith.constant 0 : index
    %1 = vector.load %arg0[%c0_1, %c0_2] : memref<8x32xf32, #tpu.memory_space<vmem>>, vector<8x32xf32>
    %c0_3 = arith.constant 0 : index
    %c0_4 = arith.constant 0 : index
    %c0_5 = arith.constant 0 : index
    %2 = vector.load %arg1[%c0_3, %c0_4, %c0_5] : memref<3x128x128xf32, #tpu.memory_space<vmem>>, vector<1x128x128xf32>
    %3 = vector.shape_cast %2 : vector<1x128x128xf32> to vector<128x128xf32>
    %4 = vector.extract_strided_slice %3 {offsets = [0, 0], sizes = [32, 128], strides = [1, 1]} : vector<128x128xf32> to vector<32x128xf32>
    %cst = arith.constant dense<0.000000e+00> : vector<8x128xf32>
    %5 = tpu.matmul %1, %4, %cst {dimension_numbers = #tpu.dot_dimension_numbers<[1], [0], [0], [1], [0, 0, 1, 1], [], []>} : vector<8x32xf32>, vector<32x128xf32>, vector<8x128xf32> -> vector<8x128xf32>
    %cst_6 = arith.constant dense<0.000000e+00> : vector<128xf32>
    %6 = vector.multi_reduction <add>, %5, %cst_6 [0] : vector<8x128xf32> to vector<128xf32>
    %7 = vector.shape_cast %6 : vector<128xf32> to vector<1x128xf32>
    %8 = arith.mulf %5, %5 : vector<8x128xf32>
    %cst_7 = arith.constant dense<0.000000e+00> : vector<128xf32>
    %9 = vector.multi_reduction <add>, %8, %cst_7 [0] : vector<8x128xf32> to vector<128xf32>
    %10 = vector.shape_cast %9 : vector<128xf32> to vector<1x128xf32>
    %cst_8 = arith.constant 1.250000e-01 : f32
    %11 = vector.broadcast %cst_8 : f32 to vector<1x128xf32>
    %12 = arith.mulf %7, %11 : vector<1x128xf32>
    %cst_9 = arith.constant 1.250000e-01 : f32
    %13 = vector.broadcast %cst_9 : f32 to vector<1x128xf32>
    %14 = arith.mulf %10, %13 : vector<1x128xf32>
    %15 = arith.mulf %12, %12 : vector<1x128xf32>
    %16 = arith.subf %14, %15 : vector<1x128xf32>
    %cst_10 = arith.constant 0.000000e+00 : f32
    %17 = vector.broadcast %cst_10 : f32 to vector<1x128xf32>
    %18 = arith.maximumf %16, %17 : vector<1x128xf32>
    %19 = vector.extract_strided_slice %0 {offsets = [0, 0], sizes = [1, 128], strides = [1, 1]} : vector<5x128xf32> to vector<1x128xf32>
    %20 = vector.shape_cast %19 : vector<1x128xf32> to vector<128xf32>
    %21 = vector.extract_strided_slice %0 {offsets = [1, 0], sizes = [1, 128], strides = [1, 1]} : vector<5x128xf32> to vector<1x128xf32>
    %22 = vector.shape_cast %21 : vector<1x128xf32> to vector<128xf32>
    %cst_11 = arith.constant 9.99999974E-6 : f32
    %23 = vector.broadcast %cst_11 : f32 to vector<1x128xf32>
    %24 = arith.addf %18, %23 : vector<1x128xf32>
    %25 = math.rsqrt %24 : vector<1x128xf32>
    %26 = vector.shape_cast %20 : vector<128xf32> to vector<1x128xf32>
    %27 = arith.mulf %26, %25 : vector<1x128xf32>
    %28 = arith.mulf %12, %27 : vector<1x128xf32>
    %29 = vector.shape_cast %22 : vector<128xf32> to vector<1x128xf32>
    %30 = arith.subf %29, %28 : vector<1x128xf32>
    %31 = vector.broadcast %27 : vector<1x128xf32> to vector<8x128xf32>
    %32 = arith.mulf %5, %31 : vector<8x128xf32>
    %33 = vector.broadcast %30 : vector<1x128xf32> to vector<8x128xf32>
    %34 = arith.addf %32, %33 : vector<8x128xf32>
    %cst_12 = arith.constant 0.000000e+00 : f32
    %35 = vector.broadcast %cst_12 : f32 to vector<8x128xf32>
    %36 = arith.maximumf %34, %35 : vector<8x128xf32>
    %c1 = arith.constant 1 : index
    %c0_13 = arith.constant 0 : index
    %c0_14 = arith.constant 0 : index
    %37 = vector.load %arg1[%c1, %c0_13, %c0_14] : memref<3x128x128xf32, #tpu.memory_space<vmem>>, vector<1x128x128xf32>
    %38 = vector.shape_cast %37 : vector<1x128x128xf32> to vector<128x128xf32>
    %cst_15 = arith.constant dense<0.000000e+00> : vector<8x128xf32>
    %39 = tpu.matmul %36, %38, %cst_15 {dimension_numbers = #tpu.dot_dimension_numbers<[1], [0], [0], [1], [0, 0, 1, 1], [], []>} : vector<8x128xf32>, vector<128x128xf32>, vector<8x128xf32> -> vector<8x128xf32>
    %cst_16 = arith.constant dense<0.000000e+00> : vector<128xf32>
    %40 = vector.multi_reduction <add>, %39, %cst_16 [0] : vector<8x128xf32> to vector<128xf32>
    %41 = vector.shape_cast %40 : vector<128xf32> to vector<1x128xf32>
    %42 = arith.mulf %39, %39 : vector<8x128xf32>
    %cst_17 = arith.constant dense<0.000000e+00> : vector<128xf32>
    %43 = vector.multi_reduction <add>, %42, %cst_17 [0] : vector<8x128xf32> to vector<128xf32>
    %44 = vector.shape_cast %43 : vector<128xf32> to vector<1x128xf32>
    %cst_18 = arith.constant 1.250000e-01 : f32
    %45 = vector.broadcast %cst_18 : f32 to vector<1x128xf32>
    %46 = arith.mulf %41, %45 : vector<1x128xf32>
    %cst_19 = arith.constant 1.250000e-01 : f32
    %47 = vector.broadcast %cst_19 : f32 to vector<1x128xf32>
    %48 = arith.mulf %44, %47 : vector<1x128xf32>
    %49 = arith.mulf %46, %46 : vector<1x128xf32>
    %50 = arith.subf %48, %49 : vector<1x128xf32>
    %cst_20 = arith.constant 0.000000e+00 : f32
    %51 = vector.broadcast %cst_20 : f32 to vector<1x128xf32>
    %52 = arith.maximumf %50, %51 : vector<1x128xf32>
    %53 = vector.extract_strided_slice %0 {offsets = [2, 0], sizes = [1, 128], strides = [1, 1]} : vector<5x128xf32> to vector<1x128xf32>
    %54 = vector.shape_cast %53 : vector<1x128xf32> to vector<128xf32>
    %55 = vector.extract_strided_slice %0 {offsets = [3, 0], sizes = [1, 128], strides = [1, 1]} : vector<5x128xf32> to vector<1x128xf32>
    %56 = vector.shape_cast %55 : vector<1x128xf32> to vector<128xf32>
    %cst_21 = arith.constant 9.99999974E-6 : f32
    %57 = vector.broadcast %cst_21 : f32 to vector<1x128xf32>
    %58 = arith.addf %52, %57 : vector<1x128xf32>
    %59 = math.rsqrt %58 : vector<1x128xf32>
    %60 = vector.shape_cast %54 : vector<128xf32> to vector<1x128xf32>
    %61 = arith.mulf %60, %59 : vector<1x128xf32>
    %62 = arith.mulf %46, %61 : vector<1x128xf32>
    %63 = vector.shape_cast %56 : vector<128xf32> to vector<1x128xf32>
    %64 = arith.subf %63, %62 : vector<1x128xf32>
    %65 = vector.broadcast %61 : vector<1x128xf32> to vector<8x128xf32>
    %66 = arith.mulf %39, %65 : vector<8x128xf32>
    %67 = vector.broadcast %64 : vector<1x128xf32> to vector<8x128xf32>
    %68 = arith.addf %66, %67 : vector<8x128xf32>
    %cst_22 = arith.constant 0.000000e+00 : f32
    %69 = vector.broadcast %cst_22 : f32 to vector<8x128xf32>
    %70 = arith.maximumf %68, %69 : vector<8x128xf32>
    %c2 = arith.constant 2 : index
    %c0_23 = arith.constant 0 : index
    %c0_24 = arith.constant 0 : index
    %71 = vector.load %arg1[%c2, %c0_23, %c0_24] : memref<3x128x128xf32, #tpu.memory_space<vmem>>, vector<1x128x128xf32>
    %72 = vector.shape_cast %71 : vector<1x128x128xf32> to vector<128x128xf32>
    %cst_25 = arith.constant dense<0.000000e+00> : vector<8x128xf32>
    %73 = tpu.matmul %70, %72, %cst_25 {dimension_numbers = #tpu.dot_dimension_numbers<[1], [0], [0], [1], [0, 0, 1, 1], [], []>} : vector<8x128xf32>, vector<128x128xf32>, vector<8x128xf32> -> vector<8x128xf32>
    %74 = vector.extract_strided_slice %0 {offsets = [4, 0], sizes = [1, 128], strides = [1, 1]} : vector<5x128xf32> to vector<1x128xf32>
    %75 = vector.shape_cast %74 : vector<1x128xf32> to vector<128xf32>
    %76 = vector.shape_cast %75 : vector<128xf32> to vector<1x128xf32>
    %77 = vector.broadcast %76 : vector<1x128xf32> to vector<8x128xf32>
    %78 = arith.addf %73, %77 : vector<8x128xf32>
    %c0_26 = arith.constant 0 : index
    %c0_27 = arith.constant 0 : index
    %79 = vector.load %arg3[%c0_26, %c0_27] : memref<8x128xf32, #tpu.memory_space<vmem>>, vector<8x128xf32>
    tpu.vector_store %arg3[%c0_26, %c0_27], %78 {strides = array<i32>} : memref<8x128xf32, #tpu.memory_space<vmem>>, vector<8x128xf32>,
    return
  }
}

</mosaic_0001>

<bundles_post_ra>
// kernel: tpu_custom_call.1
= control target key start
LH: loop header
LB: loop body
LE: loop exit
PB: predicated region body
PF: predicated region fallthrough
CT: control target
= control target key end

     0   :  { %8 = vsyncpa [#allocation3], 0  ;;  %s420_s0 = inlined_call_operand.hbm [shape: f32[8,32], index: 0, kind: input, shape index: {}]   ;;  %s421_s1 = inlined_call_operand.hbm [shape: f32[3,128,128], index: 1, kind: input, shape index: {}]   ;;  %s422_s2 = inlined_call_operand.hbm [shape: f32[5,128], index: 2, kind: input, shape index: {}]   ;;  %s423_s3 = inlined_call_operand.hbm [shape: f32[8,128], index: 3, kind: output, shape index: {}]  }
   0x1   :  { %9 = vsyncpa [#allocation6], 0  ;;  %s26_s14 = sshll.u32 %s421_s1, 4  ;;  %s27_s14 = int_to_ptr.hbm [resolvable:$true] %s26_s14 }
   0x2   :  { %10 = vsyncpa [#allocation4], 0  ;;  %s375_s15 = smov [#allocation5]   ;;  %s16_s19 = sshll.u32 %s420_s0, 4  ;;  %s17_s19 = int_to_ptr.hbm [resolvable:$true] %s16_s19 }
   0x3   :  { %s28_s16 = sshll.u32 %s375_s15, 4  ;;  %s376_s20 = smov 128   ;;  %s29_s16 = int_to_ptr.vmem [resolvable:$true] %s28_s16 }
   0x4   :  { %s377_s21 = smov 8   ;;  %s378_s22 = smov [#allocation2]  }
   0x5   :  { %34 = dma.hbm_to_vmem [thread:$0]  %s27_s14, 6144, %s29_s16, [#allocation6], %s376_s20, %s376_s20, %s377_s21  }
   0x6   :  { %s18_s23 = sshll.u32 %s378_s22, 4  ;;  %s40_s26 = sshll.u32 %s422_s2, 4  ;;  %s19_s23 = int_to_ptr.vmem [resolvable:$true] %s18_s23  ;;  %s41_s26 = int_to_ptr.hbm [resolvable:$true] %s40_s26 }
   0x7   :  { %21 = dma.hbm_to_vmem [thread:$0]  %s17_s19, 128, %s19_s23, [#allocation3]  }
   0x8   :  { %s379_s1 = smov [#allocation7]  }
   0x9   :  { %s42_s27 = sshll.u32 %s379_s1, 4  ;;  %s43_s27 = int_to_ptr.vmem [resolvable:$true] %s42_s27 }
   0xa   :  { %45 = dma.hbm_to_vmem [thread:$0]  %s41_s26, 128, %s43_s27, [#allocation6]  }
   0xb   :  { %369 = dma.done.wait [#allocation3], 128  }
   0xc   :  { %370 = vsyncadd [#allocation3], 4294967168 }
   0xd   :  { %371 = dma.done.wait [#allocation6], 6272  }
   0xe   :  { %372 = vsyncadd [#allocation6], 4294961024  ;;  %v63_v0 = vld [vmem:[#allocation5 + $0x18] sm:$0xff]  ;;  %v62_v1 = vld [vmem:[#allocation5 + $0x10] sm:$0xff]  ;;  %vm64_vm0 = vcmask 261120   ;;  %s380_s0 = smov [#allocation8]  }
   0xf   :  { %80 = vmatpush.msra.mxu0 %v63_v0  ;;  %v61_v2 = vld [vmem:[#allocation5 + $0x8] sm:$0xff]  ;;  %v60_v3 = vld [vmem:[#allocation5] sm:$0xff]  ;;  %v59_v4 = vld [vmem:[#allocation2] sm:$0xff]  ;;  %s249_s2 = sshll.u32 %s380_s0, 4  ;;  %s251_s30 = sshll.u32 %s423_s3, 4  ;;  %s250_s2 = int_to_ptr.vmem [resolvable:$true] %s249_s2  ;;  %s252_s30 = int_to_ptr.hbm [resolvable:$true] %s251_s30 }
  0x10   :  { %v144_v5 = vld [vmem:[#allocation5 + $0xf8] sm:$0xff]  ;;  %v143_v6 = vld [vmem:[#allocation5 + $0xf0] sm:$0xff]  ;;  %v142_v7 = vld [vmem:[#allocation5 + $0xe8] sm:$0xff] }
  0x11   :  { %81 = vmatpush.msra.mxu0 %v62_v1  ;;  %145 = vmatpush.msra.mxu1 %v144_v5  ;;  %v141_v8 = vld [vmem:[#allocation5 + $0xe0] sm:$0xff]  ;;  %v140_v9 = vld [vmem:[#allocation5 + $0xd8] sm:$0xff]  ;;  %v139_v13 = vld [vmem:[#allocation5 + $0xd0] sm:$0xff] }
  0x12   :  { %v138_v16 = vld [vmem:[#allocation5 + $0xc8] sm:$0xff]  ;;  %v137_v19 = vld [vmem:[#allocation5 + $0xc0] sm:$0xff]  ;;  %v136_v22 = vld [vmem:[#allocation5 + $0xb8] sm:$0xff] }
  0x13   :  { %82 = vmatpush.msra.mxu0 %v61_v2  ;;  %146 = vmatpush.msra.mxu1 %v143_v6  ;;  %v135_v25 = vld [vmem:[#allocation5 + $0xb0] sm:$0xff]  ;;  %v134_v28 = vld [vmem:[#allocation5 + $0xa8] sm:$0xff]  ;;  %v133_v31 = vld [vmem:[#allocation5 + $0xa0] sm:$0xff] }
  0x14   :  { %v132_v32 = vld [vmem:[#allocation5 + $0x98] sm:$0xff]  ;;  %v131_v35 = vld [vmem:[#allocation5 + $0x90] sm:$0xff]  ;;  %v130_v37 = vld [vmem:[#allocation5 + $0x88] sm:$0xff] }
  0x15   :  { %83 = vmatpush.msra.mxu0 %v60_v3  ;;  %147 = vmatpush.msra.mxu1 %v142_v7  ;;  %v129_v39 = vld [vmem:[#allocation5 + $0x80] sm:$0xff]  ;;  %v221_v58 = vld [vmem:[#allocation5 + $0x178] sm:$0xff]  ;;  %v220_v59 = vld [vmem:[#allocation5 + $0x170] sm:$0xff] }
  0x16   :  { %262 = vmatmul.msk.f32.vlgmr.msra.gmra.mxu0 %vm64_vm0, %v59_v4  ;;  %v410_v46 = vld [vmem:[#allocation7] sm:$0x1f]  ;;  %223 = vmatpush.msra.mxu2 %v221_v58  ;;  %v219_v60 = vld [vmem:[#allocation5 + $0x168] sm:$0xff]  ;;  %v217_v62 = vld [vmem:[#allocation5 + $0x158] sm:$0xff] }
  0x17   :  { %148 = vmatpush.msra.mxu1 %v141_v8  ;;  %v218_v61 = vld [vmem:[#allocation5 + $0x160] sm:$0xff]  ;;  %v216_v2 = vld [vmem:[#allocation5 + $0x150] sm:$0xff]  ;;  %v215_v5 = vld [vmem:[#allocation5 + $0x148] sm:$0xff] }
  0x18   :  { %224 = vmatpush.msra.mxu2 %v220_v59  ;;  %v214_v8 = vld [vmem:[#allocation5 + $0x140] sm:$0xff] }
  0x19   :  { %149 = vmatpush.msra.mxu1 %v140_v9 }
  0x1a   :  { %225 = vmatpush.msra.mxu2 %v219_v60 }
  0x1b   :  { %150 = vmatpush.msra.mxu1 %v139_v13 }
  0x1c   :  { %226 = vmatpush.msra.mxu2 %v218_v61 }
  0x1d   :  { %151 = vmatpush.msra.mxu1 %v138_v16 }
  0x1e   :  { %227 = vmatpush.msra.mxu2 %v217_v62 }
  0x1f   :  { %152 = vmatpush.msra.mxu1 %v137_v19 }
  0x20   :  { %228 = vmatpush.msra.mxu2 %v216_v2 }
  0x21   :  { %153 = vmatpush.msra.mxu1 %v136_v22 }
  0x22   :  { %229 = vmatpush.msra.mxu2 %v215_v5 }
  0x23   :  { %154 = vmatpush.msra.mxu1 %v135_v25 }
  0x24   :  { %230 = vmatpush.msra.mxu2 %v214_v8 }
  0x25   :  { %155 = vmatpush.msra.mxu1 %v134_v28  ;;  %v206_v28 = vld [vmem:[#allocation5 + $0x100] sm:$0xff] }
  0x27   :  { %156 = vmatpush.msra.mxu1 %v133_v31 }
  0x29   :  { %157 = vmatpush.msra.mxu1 %v132_v32 }
  0x2b   :  { %158 = vmatpush.msra.mxu1 %v131_v35 }
  0x2d   :  { %159 = vmatpush.msra.mxu1 %v130_v37 }
  0x2f   :  { %160 = vmatpush.msra.mxu1 %v129_v39 }
  0x93   :  { %v85_v10 = vpop.f32.mrf.mxu0 }
  0x94   :  { %v88_v11 = vrot.slane %v85_v10, 4  ;;  %v94_v12 = vmul.f32 %v85_v10, %v85_v10 }
  0x96   :  { %v89_v14 = vadd.f32 %v88_v11, %v85_v10  ;;  %v95_v15 = vrot.slane %v94_v12, 4  ;;  %v213_v11 = vld [vmem:[#allocation5 + $0x138] sm:$0xff] }
  0x97   :  { %231 = vmatpush.msra.mxu2 %v213_v11 }
  0x98   :  { %v90_v17 = vrot.slane %v89_v14, 2  ;;  %v96_v18 = vadd.f32 %v95_v15, %v94_v12 }
  0x9a   :  { %v91_v20 = vadd.f32 %v90_v17, %v89_v14  ;;  %v97_v21 = vrot.slane %v96_v18, 2  ;;  %v212_v14 = vld [vmem:[#allocation5 + $0x130] sm:$0xff]  ;;  %v211_v17 = vld [vmem:[#allocation5 + $0x128] sm:$0xff] }
  0x9b   :  { %232 = vmatpush.msra.mxu2 %v212_v14 }
  0x9c   :  { %v92_v23 = vrot.slane %v91_v20, 1  ;;  %v98_v24 = vadd.f32 %v97_v21, %v96_v18  ;;  %v209_v21 = vld [vmem:[#allocation5 + $0x118] sm:$0xff] }
  0x9d   :  { %233 = vmatpush.msra.mxu2 %v211_v17 }
  0x9e   :  { %v93_v26 = vadd.f32 %v92_v23, %v91_v20  ;;  %v99_v27 = vrot.slane %v98_v24, 1  ;;  %v210_v20 = vld [vmem:[#allocation5 + $0x120] sm:$0xff] }
  0x9f   :  { %234 = vmatpush.msra.mxu2 %v210_v20 }
  0xa0   :  { %v100_v29 = vadd.f32 %v99_v27, %v98_v24  ;;  %v101_v30 = vmul.f32 0.125, %v93_v26  ;;  %v208_v24 = vld [vmem:[#allocation5 + $0x110] sm:$0xff]  ;;  %v207_v26 = vld [vmem:[#allocation5 + $0x108] sm:$0xff] }
  0xa1   :  { %235 = vmatpush.msra.mxu2 %v209_v21 }
  0xa2   :  { %v102_v33 = vmul.f32 0.125, %v100_v29  ;;  %v103_v34 = vmul.f32 %v101_v30, %v101_v30 }
  0xa3   :  { %236 = vmatpush.msra.mxu2 %v208_v24 }
  0xa4   :  { %v104_v36 = vsub.f32 %v102_v33, %v103_v34 }
  0xa5   :  { %237 = vmatpush.msra.mxu2 %v207_v26 }
  0xa6   :  { %v105_v38 = vmax.f32 %v104_v36, 0.0 }
  0xa7   :  { %238 = vmatpush.msra.mxu2 %v206_v28 }
  0xa8   :  { %v106_v40 = vadd.f32 1e-05, %v105_v38 }
  0xaa   :  { %269 = vrsqrt.f32 %v106_v40  ;;  %vm113_vm2 = vweird.f32 %v106_v40 }
  0xb0   :  { %v270_v41 = vpop.eup %269 }
  0xb1   :  { %v108_v42 = vmul.f32 %v270_v41, %v106_v40  ;;  %vm114_vm1 = vweird.f32 %v270_v41 }
  0xb2   :  { %vm115_vm3 = vmor %vm113_vm2, %vm114_vm1 }
  0xb3   :  { %v109_v43 = vmul.f32 %v270_v41, %v108_v42 }
  0xb5   :  { %v110_v44 = vmul.f32 0.5, %v109_v43 }
  0xb7   :  { %v111_v45 = vsub.f32 1.5, %v110_v44 }
  0xb9   :  { %v112_v47 = vmul.f32 %v270_v41, %v111_v45 }
  0xbb   :  { %v116_v48 = vsel %vm115_vm3, %v270_v41, %v112_v47  ;;  %v222_v47 = vperm.slane %v410_v46, 4 }
  0xbc   :  { %v117_v49 = vmul.f32 %v116_v48, %v410_v46 }
  0xbe   :  { %v118_v50 = vmul.f32 %v117_v49, %v101_v30  ;;  %v123_v51 = vperm.slane %v117_v49, 0 }
  0xc0   :  { %v120_v52 = vrot.slane %v118_v50, 7  ;;  %v124_v54 = vmul.f32 %v123_v51, %v85_v10 }
  0xc2   :  { %v122_v53 = vsub.f32 %v410_v46, %v120_v52 }
  0xc4   :  { %v125_v55 = vperm.slane %v122_v53, 1 }
  0xc6   :  { %v126_v56 = vadd.f32 %v125_v55, %v124_v54 }
  0xc8   :  { %v127_v57 = vmax.f32 %v126_v56, 0.0 }
  0xca   :  { %161 = vmatmul.f32.vlgmr.msra.gmra.mxu1 %v127_v57 }
 0x147   :  { %v162_v63 = vpop.f32.mrf.mxu1 }
 0x148   :  { %v165_v0 = vrot.slane %v162_v63, 4  ;;  %v171_v1 = vmul.f32 %v162_v63, %v162_v63 }
 0x14a   :  { %v166_v3 = vadd.f32 %v165_v0, %v162_v63  ;;  %v172_v4 = vrot.slane %v171_v1, 4 }
 0x14c   :  { %v167_v6 = vrot.slane %v166_v3, 2  ;;  %v173_v7 = vadd.f32 %v172_v4, %v171_v1 }
 0x14e   :  { %v168_v9 = vadd.f32 %v167_v6, %v166_v3  ;;  %v174_v10 = vrot.slane %v173_v7, 2 }
 0x150   :  { %v169_v12 = vrot.slane %v168_v9, 1  ;;  %v175_v13 = vadd.f32 %v174_v10, %v173_v7 }
 0x152   :  { %v170_v15 = vadd.f32 %v169_v12, %v168_v9  ;;  %v176_v16 = vrot.slane %v175_v13, 1 }
 0x154   :  { %v177_v18 = vadd.f32 %v176_v16, %v175_v13  ;;  %v178_v19 = vmul.f32 0.125, %v170_v15 }
 0x156   :  { %v179_v22 = vmul.f32 0.125, %v177_v18  ;;  %v180_v23 = vmul.f32 %v178_v19, %v178_v19 }
 0x158   :  { %v181_v25 = vsub.f32 %v179_v22, %v180_v23 }
 0x15a   :  { %v182_v27 = vmax.f32 %v181_v25, 0.0 }
 0x15c   :  { %v183_v29 = vadd.f32 1e-05, %v182_v27 }
 0x15e   :  { %271 = vrsqrt.f32 %v183_v29  ;;  %vm190_vm5 = vweird.f32 %v183_v29 }
 0x164   :  { %v272_v30 = vpop.eup %271 }
 0x165   :  { %v185_v31 = vmul.f32 %v272_v30, %v183_v29  ;;  %vm191_vm4 = vweird.f32 %v272_v30 }
 0x166   :  { %vm192_vm6 = vmor %vm190_vm5, %vm191_vm4 }
 0x167   :  { %v186_v32 = vmul.f32 %v272_v30, %v185_v31 }
 0x169   :  { %v187_v33 = vmul.f32 0.5, %v186_v32 }
 0x16b   :  { %v188_v34 = vsub.f32 1.5, %v187_v33 }
 0x16d   :  { %v189_v35 = vmul.f32 %v272_v30, %v188_v34 }
 0x16f   :  { %v193_v36 = vsel %vm192_vm6, %v272_v30, %v189_v35 }
 0x170   :  { %v194_v37 = vmul.f32 %v193_v36, %v410_v46 }
 0x172   :  { %v195_v38 = vmul.f32 %v194_v37, %v178_v19  ;;  %v200_v39 = vperm.slane %v194_v37, 2 }
 0x174   :  { %v197_v40 = vrot.slane %v195_v38, 7  ;;  %v201_v42 = vmul.f32 %v200_v39, %v162_v63 }
 0x176   :  { %v199_v41 = vsub.f32 %v410_v46, %v197_v40 }
 0x178   :  { %v202_v43 = vperm.slane %v199_v41, 3 }
 0x17a   :  { %v203_v44 = vadd.f32 %v202_v43, %v201_v42 }
 0x17c   :  { %v204_v45 = vmax.f32 %v203_v44, 0.0 }
 0x17e   :  { %239 = vmatmul.f32.vlgmr.msra.gmra.mxu2 %v204_v45 }
 0x201   :  { %v240_v48 = vpop.f32.mrf.mxu2 }
 0x202   :  { %v241_v49 = vadd.f32 %v240_v48, %v222_v47 }
 0x204   :  { %243 = vst [vmem:[#allocation8] sm:$0xff] %v241_v49 }
 0x205   :  { %254 = dma.vmem_to_hbm [thread:$0]  %s250_s2, 128, %s252_s30, [#allocation4]  }
 0x206   :  { %373 = dma.done.wait [#allocation4], 128  }
 0x207   :  { %374 = vsyncadd [#allocation4], 4294967168 }
 0x208   :  { %259 = vsyncpa [#allocation3], 1 }
 0x209   :  { %260 = vsyncpa [#allocation6], 1 }
 0x20a   :  { %261 = vsyncpa [#allocation4], 1 }

</bundles_post_ra>
